<compile_context>
chip_gen: v5e
topology: v5e:2x2
jax: 0.10.0
libtpu: 0.0.40
codegen_flags: <defaults>
</compile_context>

<pallas_src>
import numpy as np
import jax
import jax.numpy as jnp
from jax import lax
from jax.experimental import pallas as pl
from jax.experimental.pallas import tpu as pltpu


def _pool_cols(in_size: int, k: int) -> np.ndarray:
    """1-D average pool (kernel=k, stride=k) as an (in_size, in_size//k) matrix."""
    out = in_size // k
    P = np.zeros((in_size, out), dtype=np.float32)
    for p in range(out):
        P[p * k:(p + 1) * k, p] = 1.0 / k
    return P


def _interp_rows(out_size: int, in_size: int) -> np.ndarray:
    """1-D bilinear interpolation (align_corners=True) as (out_size, in_size)."""
    A = np.zeros((out_size, in_size), dtype=np.float32)
    if out_size == 1 or in_size == 1:
        A[:, 0] = 1.0
        return A
    scale = (in_size - 1) / (out_size - 1)
    for i in range(out_size):
        s = i * scale
        i0 = int(np.floor(s))
        i1 = min(i0 + 1, in_size - 1)
        f = s - i0
        A[i, i0] += 1.0 - f
        A[i, i1] += f
    return A


def spatial_se_kernel(x_ref, w1_ref, w2_ref, pw_ref, ah_ref, aw_ref, o_ref):
    # x_ref : (1, C, H, W)  activations, W on the lane dim
    # w1_ref: (Cr, C)       first 1x1 conv weight (PyTorch layout, squeezed)
    # w2_ref: (C, Cr)       second 1x1 conv weight
    # pw_ref: (W, w)        1-D avg-pool over columns  (W -> w)
    # ah_ref: (H, h)        1-D bilinear upsample over rows    (h -> H)
    # aw_ref: (w, W)        1-D bilinear upsample over columns (w -> W)
    _, C, H, W = x_ref.shape
    w = pw_ref.shape[1]
    h = ah_ref.shape[1]

    x = x_ref[0]                                                     # (C, H, W)

    # ---- squeeze: 4x4 average pool, separable ---------------------------
    # pool over W: lane-contraction matmul on the MXU
    t = jnp.dot(x.reshape(C * H, W), pw_ref[...],
                preferred_element_type=jnp.float32)                  # (C*H, w)
    # pool over H: mean of 4 consecutive rows (sublane-group reduce)
    pooled = jnp.mean(t.reshape(C, h, 4, w), axis=2)                 # (C, h, w)

    # ---- excitation: 1x1 conv -> ReLU -> 1x1 conv (channel matmuls) -----
    pflat = pooled.reshape(C, h * w)                  # spatial on the lane dim
    hid = jnp.maximum(
        jnp.dot(w1_ref[...], pflat, preferred_element_type=jnp.float32), 0.0)
    sq = jnp.dot(w2_ref[...], hid,
                 preferred_element_type=jnp.float32)                 # (C, h*w)

    # ---- bilinear upsample (align_corners=True), separable --------------
    # rows: per-channel batched (H, h) @ (h, w) matmul on the small map
    sq3 = sq.reshape(C, h, w)
    ah_b = jnp.broadcast_to(ah_ref[...], (C, H, h))
    u = lax.dot_general(ah_b, sq3,
                        dimension_numbers=(((2,), (1,)), ((0,), (0,))),
                        preferred_element_type=jnp.float32)          # (C, H, w)
    # cols: one big 2D matmul producing W on the lane dim
    up = jnp.dot(u.reshape(C * H, w), aw_ref[...],
                 preferred_element_type=jnp.float32)                 # (C*H, W)
    up = up.reshape(C, H, W)

    # ---- gate: x * sigmoid(up); exp and reciprocal both ride the EUP ----
    gate = pl.reciprocal(1.0 + jnp.exp(-up), approx=True)
    o_ref[0] = (x * gate).astype(o_ref.dtype)


def spatial_se_pallas(x_nchw, w1, w2):
    """x_nchw: (N, C, H, W); w1: (Cr, C); w2: (C, Cr). Returns (N, C, H, W)."""
    N, C, H, W = x_nchw.shape
    assert H % 4 == 0 and W % 4 == 0, "AvgPool2d(4,4) path assumes H,W % 4 == 0"
    h, w = H // 4, W // 4
    Cr = w1.shape[0]

    pw = jnp.asarray(_pool_cols(W, 4))          # (W, w)
    ah = jnp.asarray(_interp_rows(H, h))        # (H, h)
    aw = jnp.asarray(_interp_rows(W, w).T)      # (w, W)

    return pl.pallas_call(
        spatial_se_kernel,
        out_shape=jax.ShapeDtypeStruct((N, C, H, W), x_nchw.dtype),
        # One batch element per grid step.  "parallel" lets v7x shard the two
        # elements across its two TensorCores; on v6e/v5e the serial 2-step
        # grid overhead is negligible.  (For very large H*W*C a spatial tile
        # axis would be added here to bound the VMEM-resident block.)
        grid=(N,),
        in_specs=[
            pl.BlockSpec((1, C, H, W), lambda n: (n, 0, 0, 0)),
            pl.BlockSpec((Cr, C), lambda n: (0, 0)),
            pl.BlockSpec((C, Cr), lambda n: (0, 0)),
            pl.BlockSpec((W, w), lambda n: (0, 0)),
            pl.BlockSpec((H, h), lambda n: (0, 0)),
            pl.BlockSpec((w, W), lambda n: (0, 0)),
        ],
        out_specs=pl.BlockSpec((1, C, H, W), lambda n: (n, 0, 0, 0)),
        compiler_params=pltpu.CompilerParams(
            dimension_semantics=("parallel",)),
    )(x_nchw, w1, w2, pw, ah, aw)


def spatial_se_reference(x, w1, w2):
    """Pure-JAX reference matching the PyTorch forward (NCHW layout)."""
    N, C, H, W = x.shape
    h, w = H // 4, W // 4
    # AvgPool2d(4, 4)
    y = x.reshape(N, C, h, 4, w, 4).mean(axis=(3, 5))
    # 1x1 conv -> ReLU -> 1x1 conv (bias=False)
    y = jnp.maximum(jnp.einsum('oc,nchw->nohw', w1, y), 0.0)
    y = jnp.einsum('co,nohw->nchw', w2, y)
    # F.interpolate(size=(H, W), mode='bilinear', align_corners=True)
    sy = jnp.arange(H, dtype=jnp.float32) * ((h - 1) / (H - 1))
    sx = jnp.arange(W, dtype=jnp.float32) * ((w - 1) / (W - 1))
    y0 = jnp.floor(sy).astype(jnp.int32)
    y1 = jnp.minimum(y0 + 1, h - 1)
    fy = (sy - y0)[None, None, :, None]
    x0 = jnp.floor(sx).astype(jnp.int32)
    x1 = jnp.minimum(x0 + 1, w - 1)
    fx = (sx - x0)[None, None, None, :]
    ytop, ybot = y[:, :, y0], y[:, :, y1]
    top = ytop[:, :, :, x0] * (1 - fx) + ytop[:, :, :, x1] * fx
    bot = ybot[:, :, :, x0] * (1 - fx) + ybot[:, :, :, x1] * fx
    up = top * (1 - fy) + bot * fy
    return x * jax.nn.sigmoid(up)


if __name__ == "__main__":
    # Small shapes consistent with the module: N=2, C=4, H=W=16, reduction=2.
    N, C, H, W = 2, 4, 16, 16
    reduction = 2
    Cr = C // reduction

    key = jax.random.PRNGKey(0)
    kx, k1, k2 = jax.random.split(key, 3)

    # Input in PyTorch NCHW convention (kernel consumes NCHW directly).
    x = jax.random.normal(kx, (N, C, H, W), dtype=jnp.float32)

    # Conv2d weights (bias=False), squeezed PyTorch layout: (out_ch, in_ch).
    w1 = 0.5 * jax.random.normal(k1, (Cr, C), dtype=jnp.float32)
    w2 = 0.5 * jax.random.normal(k2, (C, Cr), dtype=jnp.float32)

    out = spatial_se_pallas(x, w1, w2)
    jax.block_until_ready(out)

    ref = spatial_se_reference(x, w1, w2)
    # Tolerance covers the EUP approximate-reciprocal sigmoid (~1e-4 rel).
    np.testing.assert_allclose(np.asarray(out), np.asarray(ref),
                               rtol=2e-3, atol=2e-3)

    print("KERNEL_OK")
</pallas_src>

<mosaic_0001>
module attributes {stable_mosaic.version = 11 : i64} {
  func.func @spatial_se_kernel(%arg0: i32, %arg1: memref<1x4x16x16xf32, #tpu.memory_space<vmem>>, %arg2: memref<2x4xf32, #tpu.memory_space<vmem>>, %arg3: memref<4x2xf32, #tpu.memory_space<vmem>>, %arg4: memref<16x4xf32, #tpu.memory_space<vmem>>, %arg5: memref<16x4xf32, #tpu.memory_space<vmem>>, %arg6: memref<4x16xf32, #tpu.memory_space<vmem>>, %arg7: memref<1x4x16x16xf32, #tpu.memory_space<vmem>>) attributes {dimension_semantics = [#tpu.dimension_semantics<parallel>], iteration_bounds = array<i64: 2>, scalar_prefetch = 0 : i64, scratch_operands = 0 : i64, tpu.core_type = #tpu.core_type<tc>, window_params = [{transform_indices = @transform_0, window_bounds = array<i64: 1, 4, 16, 16>}, {pipeline_mode = #tpu.pipeline_mode<synchronous>, transform_indices = @transform_1, window_bounds = array<i64: 2, 4>}, {pipeline_mode = #tpu.pipeline_mode<synchronous>, transform_indices = @transform_2, window_bounds = array<i64: 4, 2>}, {pipeline_mode = #tpu.pipeline_mode<synchronous>, transform_indices = @transform_3, window_bounds = array<i64: 16, 4>}, {pipeline_mode = #tpu.pipeline_mode<synchronous>, transform_indices = @transform_4, window_bounds = array<i64: 16, 4>}, {pipeline_mode = #tpu.pipeline_mode<synchronous>, transform_indices = @transform_5, window_bounds = array<i64: 4, 16>}, {transform_indices = @transform_6, window_bounds = array<i64: 1, 4, 16, 16>}]} {
    %c0 = arith.constant 0 : index
    %c0_0 = arith.constant 0 : index
    %c0_1 = arith.constant 0 : index
    %c0_2 = arith.constant 0 : index
    %0 = vector.load %arg1[%c0, %c0_0, %c0_1, %c0_2] : memref<1x4x16x16xf32, #tpu.memory_space<vmem>>, vector<1x4x16x16xf32>
    %1 = vector.shape_cast %0 : vector<1x4x16x16xf32> to vector<4x16x16xf32>
    %2 = vector.shape_cast %1 : vector<4x16x16xf32> to vector<64x16xf32>
    %c0_3 = arith.constant 0 : index
    %c0_4 = arith.constant 0 : index
    %3 = vector.load %arg4[%c0_3, %c0_4] : memref<16x4xf32, #tpu.memory_space<vmem>>, vector<16x4xf32>
    %cst = arith.constant dense<0.000000e+00> : vector<64x4xf32>
    %4 = tpu.matmul %2, %3, %cst {dimension_numbers = #tpu.dot_dimension_numbers<[1], [0], [0], [1], [0, 0, 1, 1], [], []>} : vector<64x16xf32>, vector<16x4xf32>, vector<64x4xf32> -> vector<64x4xf32>
    %5 = vector.shape_cast %4 : vector<64x4xf32> to vector<4x4x4x4xf32>
    %cst_5 = arith.constant dense<0.000000e+00> : vector<4x4x4xf32>
    %6 = vector.multi_reduction <add>, %5, %cst_5 [2] : vector<4x4x4x4xf32> to vector<4x4x4xf32>
    %cst_6 = arith.constant 4.000000e+00 : f32
    %7 = vector.broadcast %cst_6 : f32 to vector<4x4x4xf32>
    %8 = arith.divf %6, %7 : vector<4x4x4xf32>
    %9 = vector.shape_cast %8 : vector<4x4x4xf32> to vector<4x16xf32>
    %c0_7 = arith.constant 0 : index
    %c0_8 = arith.constant 0 : index
    %10 = vector.load %arg2[%c0_7, %c0_8] : memref<2x4xf32, #tpu.memory_space<vmem>>, vector<2x4xf32>
    %cst_9 = arith.constant dense<0.000000e+00> : vector<2x16xf32>
    %11 = tpu.matmul %10, %9, %cst_9 {dimension_numbers = #tpu.dot_dimension_numbers<[1], [0], [0], [1], [0, 0, 1, 1], [], []>} : vector<2x4xf32>, vector<4x16xf32>, vector<2x16xf32> -> vector<2x16xf32>
    %cst_10 = arith.constant 0.000000e+00 : f32
    %12 = vector.broadcast %cst_10 : f32 to vector<2x16xf32>
    %13 = arith.maximumf %11, %12 : vector<2x16xf32>
    %c0_11 = arith.constant 0 : index
    %c0_12 = arith.constant 0 : index
    %14 = vector.load %arg3[%c0_11, %c0_12] : memref<4x2xf32, #tpu.memory_space<vmem>>, vector<4x2xf32>
    %cst_13 = arith.constant dense<0.000000e+00> : vector<4x16xf32>
    %15 = tpu.matmul %14, %13, %cst_13 {dimension_numbers = #tpu.dot_dimension_numbers<[1], [0], [0], [1], [0, 0, 1, 1], [], []>} : vector<4x2xf32>, vector<2x16xf32>, vector<4x16xf32> -> vector<4x16xf32>
    %16 = vector.shape_cast %15 : vector<4x16xf32> to vector<4x4x4xf32>
    %c0_14 = arith.constant 0 : index
    %c0_15 = arith.constant 0 : index
    %17 = vector.load %arg5[%c0_14, %c0_15] : memref<16x4xf32, #tpu.memory_space<vmem>>, vector<16x4xf32>
    %18 = vector.shape_cast %17 : vector<16x4xf32> to vector<1x16x4xf32>
    %19 = vector.broadcast %18 : vector<1x16x4xf32> to vector<4x16x4xf32>
    %cst_16 = arith.constant dense<0.000000e+00> : vector<4x16x4xf32>
    %20 = tpu.matmul %19, %16, %cst_16 {dimension_numbers = #tpu.dot_dimension_numbers<[2], [1], [1], [2], [0, 0, 0, 1, 1, 2], [0], [0]>} : vector<4x16x4xf32>, vector<4x4x4xf32>, vector<4x16x4xf32> -> vector<4x16x4xf32>
    %21 = vector.shape_cast %20 : vector<4x16x4xf32> to vector<64x4xf32>
    %c0_17 = arith.constant 0 : index
    %c0_18 = arith.constant 0 : index
    %22 = vector.load %arg6[%c0_17, %c0_18] : memref<4x16xf32, #tpu.memory_space<vmem>>, vector<4x16xf32>
    %cst_19 = arith.constant dense<0.000000e+00> : vector<64x16xf32>
    %23 = tpu.matmul %21, %22, %cst_19 {dimension_numbers = #tpu.dot_dimension_numbers<[1], [0], [0], [1], [0, 0, 1, 1], [], []>} : vector<64x4xf32>, vector<4x16xf32>, vector<64x16xf32> -> vector<64x16xf32>
    %24 = vector.shape_cast %23 : vector<64x16xf32> to vector<4x16x16xf32>
    %cst_20 = arith.constant 0.000000e+00 : f32
    %25 = vector.broadcast %cst_20 : f32 to vector<4x16x16xf32>
    %26 = arith.subf %25, %24 : vector<4x16x16xf32>
    %27 = math.exp %26 : vector<4x16x16xf32>
    %cst_21 = arith.constant 1.000000e+00 : f32
    %28 = vector.broadcast %cst_21 : f32 to vector<4x16x16xf32>
    %29 = arith.addf %28, %27 : vector<4x16x16xf32>
    %30 = tpu.reciprocal %29 {approx = true} : vector<4x16x16xf32> -> vector<4x16x16xf32>
    %31 = arith.mulf %1, %30 : vector<4x16x16xf32>
    %c0_22 = arith.constant 0 : index
    %c0_23 = arith.constant 0 : index
    %c0_24 = arith.constant 0 : index
    %c0_25 = arith.constant 0 : index
    %32 = vector.load %arg7[%c0_22, %c0_23, %c0_24, %c0_25] : memref<1x4x16x16xf32, #tpu.memory_space<vmem>>, vector<1x4x16x16xf32>
    %33 = vector.shape_cast %32 : vector<1x4x16x16xf32> to vector<4x16x16xf32>
    %34 = vector.shape_cast %31 : vector<4x16x16xf32> to vector<1x4x16x16xf32>
    tpu.vector_store %arg7[%c0_22, %c0_23, %c0_24, %c0_25], %34 {strides = array<i32>} : memref<1x4x16x16xf32, #tpu.memory_space<vmem>>, vector<1x4x16x16xf32>,
    return
  }
  func.func @transform_0(%arg0: i32) -> (i32, i32, i32, i32) {
    %c0_i32 = arith.constant 0 : i32
    %c0_i32_0 = arith.constant 0 : i32
    %c0_i32_1 = arith.constant 0 : i32
    %c0_i32_2 = arith.constant 0 : i32
    return %arg0, %c0_i32, %c0_i32_0, %c0_i32_1 : i32, i32, i32, i32
  }
  func.func @transform_1(%arg0: i32) -> (i32, i32) {
    %c0_i32 = arith.constant 0 : i32
    %c0_i32_0 = arith.constant 0 : i32
    %c0_i32_1 = arith.constant 0 : i32
    return %c0_i32, %c0_i32_0 : i32, i32
  }
  func.func @transform_2(%arg0: i32) -> (i32, i32) {
    %c0_i32 = arith.constant 0 : i32
    %c0_i32_0 = arith.constant 0 : i32
    %c0_i32_1 = arith.constant 0 : i32
    return %c0_i32, %c0_i32_0 : i32, i32
  }
  func.func @transform_3(%arg0: i32) -> (i32, i32) {
    %c0_i32 = arith.constant 0 : i32
    %c0_i32_0 = arith.constant 0 : i32
    %c0_i32_1 = arith.constant 0 : i32
    return %c0_i32, %c0_i32_0 : i32, i32
  }
  func.func @transform_4(%arg0: i32) -> (i32, i32) {
    %c0_i32 = arith.constant 0 : i32
    %c0_i32_0 = arith.constant 0 : i32
    %c0_i32_1 = arith.constant 0 : i32
    return %c0_i32, %c0_i32_0 : i32, i32
  }
  func.func @transform_5(%arg0: i32) -> (i32, i32) {
    %c0_i32 = arith.constant 0 : i32
    %c0_i32_0 = arith.constant 0 : i32
    %c0_i32_1 = arith.constant 0 : i32
    return %c0_i32, %c0_i32_0 : i32, i32
  }
  func.func @transform_6(%arg0: i32) -> (i32, i32, i32, i32) {
    %c0_i32 = arith.constant 0 : i32
    %c0_i32_0 = arith.constant 0 : i32
    %c0_i32_1 = arith.constant 0 : i32
    %c0_i32_2 = arith.constant 0 : i32
    return %arg0, %c0_i32, %c0_i32_0, %c0_i32_1 : i32, i32, i32, i32
  }
}

</mosaic_0001>

<bundles_post_ra>
// kernel: tpu_custom_call.1
= control target key start
LH: loop header
LB: loop body
LE: loop exit
PB: predicated region body
PF: predicated region fallthrough
CT: control target
= control target key end

     0   :  { %11 = vsyncpa [#allocation3], 0  ;;  %s1604_s0 = inlined_call_operand.hbm [shape: f32[2,4,16,16], index: 0, kind: input, shape index: {}]   ;;  %s1605_s1 = inlined_call_operand.vmem [shape: f32[2,4], index: 1, kind: input, shape index: {}]   ;;  %s1606_s2 = inlined_call_operand.vmem [shape: f32[4,2], index: 2, kind: input, shape index: {}]   ;;  %s1607_s3 = inlined_call_operand.vmem [shape: f32[16,4], index: 3, kind: input, shape index: {}]   ;;  %s1608_s4 = inlined_call_operand.vmem [shape: f32[16,4], index: 4, kind: input, shape index: {}]   ;;  %s1609_s5 = inlined_call_operand.vmem [shape: f32[4,16], index: 5, kind: input, shape index: {}]   ;;  %s1610_s6 = inlined_call_operand.hbm [shape: f32[2,4,16,16], index: 6, kind: output, shape index: {}]  }
   0x1   :  { %13 = vsyncpa [#allocation3 + $0x1], 0 }
   0x2   :  { %14 = vsyncpa [#allocation4], 0 }
   0x3   :  { %16 = vsyncpa [#allocation4 + $0x1], 0  ;;  %s1301_s21 = smov 0   ;;  %s1303_s22 = smov 0  }
   0x4   :  { %s1305_s23 = smov 0   ;;  %s1307_s24 = smov 0  }
   0x5 LB: > { %s1322_s25 = sadd.s32 4294967295, %s1252_s24   ;;  %s1012_s26 = sadd.s32 4294967294, %s1252_s24   ;;  %s1252_s24 = sphi %s1307_s24, %s1620_s24   ;;  %s1248_s23 = sphi %s1305_s23, %s1619_s23   ;;  %s1244_s22 = sphi %s1303_s22, %s1618_s22   ;;  %s1240_s21 = sphi %s1301_s21, %s1617_s21  }
   0x6   : > { %s1326_s27 = sadd.s32 1, %s1252_s24   ;;  %s29_s28 = sadd.s32 1, %s1248_s23 }
   0x7   : > { %s26_s29 = ssub.s32 %s1252_s24, %s1326_s27  ;;  %p36_p0 = scmp.ne.s32.totalorder %s1248_s23, %s1244_s22 }
   0x8   : > { %p27_p1 = scmp.eq.s32.totalorder %s26_s29, 0  ;;  %p37_p2 = scmp.eq.s32.totalorder %s1252_s24, 0 }
   0x9   : > { %p42_p3 = scmp.ne.s32.totalorder %s1244_s22, %s1240_s21  ;;  %p43_p4 = scmp.eq.s32.totalorder %s1322_s25, 0 }
   0xa   : > { %s1338_s30 = scalar_select %p27_p1, %s1248_s23, %s29_s28  }
   0xb   : > { %p1340_p5 = por %p37_p2, %p36_p0  ;;  %p1344_p6 = por %p43_p4, %p42_p3 }
   0xc   : > { %p171_p7 = scmp.eq.s32.totalorder %s1322_s25, 1  ;;  %p177_p8 = scmp.eq.s32.totalorder %s1012_s26, 1 }
   0xd   : > { %p1076_p10 = scmp.lt.s32.totalorder %s1252_s24, 2  ;;  %s212_s11 = sand.u32 1, %s1248_s23  }
   0xe   : > { %p1351_p11 = por %p171_p7, %p36_p0  ;;  %p1355_p12 = por %p177_p8, %p42_p3 }
   0xf   : > { %s1059_s12 = sshll.u32 %s1252_s24, 6  ;;  %s1015_s13 = sshll.u32 %s212_s11, 6 }
  0x10   : > { %s221_s16 = scalar_lea.hbm %s1604_s0, %s1059_s12  ;;  %s216_s18 = scalar_lea.vmem [#allocation2], %s1015_s13 }
  0x11   : > { %s222_s17 = sshll.u32 %s221_s16, 4  ;;  %s224_s19 = sshll.u32 %s216_s18, 4  ;;  %s223_s17 = int_to_ptr.hbm [resolvable:$true] %s222_s17  ;;  %s225_s19 = int_to_ptr.vmem [resolvable:$true] %s224_s19 }
  0x12   : > { %p1366_p13 = pnand %p1076_p10, %p1340_p5  ;;  %p1018_p0 = scmp.ge.s32.totalorder %s1252_s24, 1 }
  0x13   : > { %p232_p1 = scmp.lt.s32.totalorder %s1252_s24, 3  ;;  %s213_s26 = scalar_lea.sflag [#allocation3], %s212_s11 }
  0x14   : > { %s1156_s28 = sshra.s32 %s223_s17, 4  ;;  %p1160_p3 = pneg %p1366_p13  ;;  %s1157_s28 = int_to_ptr.hbm [resolvable:$true] %s1156_s28 }
  0x15   : > { %s1158_s29 = scalar_lea.hbm %s1157_s28, 64  ;;  %s1163_s7 = scalar_lea.hbm %s1604_s0, 128 }
  0x16   : > { %p1159_p2 = scmp.ne.s32.totalorder %s1157_s28, %s1158_s29  ;;  %p1164_p5 = scmp.lt.s32.totalorder %s1157_s28, %s1604_s0 }
  0x17   : > { %p1165_p8 = scmp.lt.s32.totalorder %s1163_s7, %s1158_s29 }
  0x18   : > { %p1161_p4 = pnand %p1160_p3, %p1159_p2 }
  0x19   : > { %p1166_p10 = por %p1165_p8, %p1164_p5 }
  0x1a   : > { %p1162_p7 = pneg %p1161_p4 }
  0x1c   : > { %p1167_p9 = pnand %p1166_p10, %p1162_p7 }
  0x1e   : > { %1170 = shalt.err (!%p1167_p9)
}
  0x1f   : > { %s1254_s11 = smov 128   ;;  %s1255_s16 = smov 8  }
  0x20   : > { %1071 = dma.hbm_to_vmem [thread:$0]  (!%p1366_p13), %s223_s17, 1024, %s225_s19, %s213_s26, %s1254_s11, %s1254_s11, %s1255_s16  }
  0x21   : > { %p233_p2 = pnand %p1018_p0, %p232_p1 }
  0x22   : > { %s1387_s18 = sand.u32 (!%p233_p2), 1, %s1244_s22  }
  0x23   : > { %236 = sbr.rel (%p233_p2) target bundleno = 1079 (0x437), region = 44  ;;  %s1019_s28 = sshll.u32 (!%p233_p2), %s1387_s18, 6 }
  0x24   : > { %s239_s29 = scalar_lea.sflag (!%p233_p2), [#allocation3], %s1387_s18  ;;  %s242_s12 = scalar_lea.vmem (!%p233_p2), [#allocation2], %s1019_s28 }
  0x28   : > { %1231 = dma.done.wait (%p1344_p6), %s239_s29, 1024  }
  0x29   : > { %1233 = vsyncadd (%p1344_p6), %s239_s29, 4294966272  ;;  %v281_v0 = vld [vmem:[%s1607_s3 + $0x8] sm:$0xff]  ;;  %v280_v1 = vld [vmem:[%s1607_s3] sm:$0xff]  ;;  %vm282_vm0 = vcmask 130048   ;;  %vm372_vm1 = vcmask 27648   ;;  %v1256_v13 = vmov 4.0  }
  0x2a   : > { %321 = vmatpush.msra.mxu0 %v281_v0  ;;  %v1403_v2 = vld [vmem:[%s242_s12] sm:$0xff]  ;;  %1061 = vmatpush.msra.mxu3 %v281_v0  ;;  %v1407_v3 = vld [vmem:[%s242_s12 + $0x38] sm:$0xff]  ;;  %v1411_v4 = vld [vmem:[%s242_s12 + $0x8] sm:$0xff]  ;;  %1122 = vrcp.f32 %v1256_v13  ;;  %vm524_vm3 = vcmask 1041409   ;;  %vm526_vm4 = vcmask 1042434   ;;  %vm528_vm5 = vcmask 1043459  }
  0x2b   : > { %v1415_v5 = vld [vmem:[%s242_s12 + $0x10] sm:$0xff]  ;;  %v1419_v6 = vld [vmem:[%s242_s12 + $0x18] sm:$0xff]  ;;  %v1423_v7 = vld [vmem:[%s242_s12 + $0x20] sm:$0xff]  ;;  %vm544_vm6 = vcmask 1047556   ;;  %s1259_s8 = smov 12   ;;  %s1260_s13 = smov 4  }
  0x2c   : > { %322 = vmatpush.msra.mxu0 %v280_v1  ;;  %1062 = vmatpush.msra.mxu3 %v280_v1  ;;  %v1427_v8 = vld [vmem:[%s242_s12 + $0x28] sm:$0xff]  ;;  %v1431_v9 = vld [vmem:[%s242_s12 + $0x30] sm:$0xff]  ;;  %s1261_s7 = smov 8   ;;  %vm584_vm7 = vcmask 31744   ;;  %vm586_vm8 = vcmask 64512   ;;  %vm588_vm9 = vcmask 97280  }
  0x2d   : > { %1021 = vmatmul.msk.f32.vlgmr.msra.gmra.mxu0 %vm282_vm0, %v1403_v2  ;;  %1028 = vmatmul.msk.f32.vlgmr.msra.gmra.mxu3 %vm282_vm0, %v1407_v3  ;;  %vm594_vm10 = vcmask 1043456   ;;  %vm624_vm11 = vcmask 1041408   ;;  %vm620_vm12 = vcmask 15360   ;;  %s1262_s29 = smov 116   ;;  %s1263_s12 = smov 120  }
  0x2e   : > { %s1264_s17 = smov 124   ;;  %s1544_s15 = scalar_lea.vmem [#allocation5], %s1019_s28 }
  0x2f   : > { %s1060_s28 = sshll.u32 %s1322_s25, 6  ;;  %s924_s25 = scalar_lea.sflag [#allocation4], %s1387_s18 }
  0x30   : > { %v1123_v18 = vpop.eup %1122 }
  0x31   : > { %v486_v21 = vmul.f32 4.0, %v1123_v18  ;;  %vm490_vm2 = vweird.f32 %v1123_v18 }
  0x33   : > { %v487_v27 = vsub.f32 1.0, %v486_v21 }
  0x35   : > { %1022 = vmatmul.msk.f32.gmra.mxu0 %vm282_vm0, %v1411_v4  ;;  %v488_v33 = vmul.f32 %v1123_v18, %v487_v27 }
  0x37   : > { %v489_v42 = vadd.f32 %v1123_v18, %v488_v33 }
  0x39   : > { %v1447_v60 = vsel %vm490_vm2, %v1123_v18, %v489_v42 }
  0x3d   : > { %1023 = vmatmul.msk.f32.gmra.mxu0 %vm282_vm0, %v1415_v5 }
  0x45   : > { %1024 = vmatmul.msk.f32.gmra.mxu0 %vm282_vm0, %v1419_v6 }
  0x4d   : > { %1025 = vmatmul.msk.f32.gmra.mxu0 %vm282_vm0, %v1423_v7 }
  0x55   : > { %1026 = vmatmul.msk.f32.gmra.mxu0 %vm282_vm0, %v1427_v8 }
  0x5d   : > { %1027 = vmatmul.msk.f32.gmra.mxu0 %vm282_vm0, %v1431_v9 }
  0xaa   : > { %v324_v10 = vpop.f32.mrf.mxu0 }
  0xab   : > { %v356_v12 = vrot.slane %v324_v10, 4  ;;  %v373_v14 = vsel %vm372_vm1, %v324_v10, 0.0 }
  0xac   : > { %v374_v16 = vrot.slane %v373_v14, 4 }
  0xad   : > { %v380_v15 = vsel %vm372_vm1, %v356_v12, 0.0 }
  0xae   : > { %v381_v19 = vrot.slane %v380_v15, 4  ;;  %v375_v20 = vadd.f32 %v374_v16, %v373_v14 }
  0xb0   : > { %v382_v23 = vadd.f32 %v381_v19, %v380_v15  ;;  %v376_v26 = vrot.slane %v375_v20, 2  ;;  %v345_v34 = vpop.f32.mrf.mxu3 }
  0xb1   : > { %v363_v39 = vrot.slane %v345_v34, 4  ;;  %v471_v40 = vsel %vm372_vm1, %v345_v34, 0.0 }
  0xb2   : > { %v327_v11 = vpop.f32.mrf.mxu0  ;;  %v383_v29 = vrot.slane %v382_v23, 2  ;;  %v377_v32 = vadd.f32 %v376_v26, %v375_v20  ;;  %v472_v51 = vrot.slane %v471_v40, 4 }
  0xb3   : > { %v387_v22 = vsel %vm372_vm1, %v327_v11, 0.0  ;;  %v357_v24 = vrot.slane %v327_v11, 4  ;;  %v478_v55 = vsel %vm372_vm1, %v363_v39, 0.0 }
  0xb4   : > { %v388_v25 = vrot.slane %v387_v22, 4  ;;  %v384_v37 = vadd.f32 %v383_v29, %v382_v23  ;;  %v378_v41 = vrot.slane %v377_v32, 1  ;;  %v473_v1 = vadd.f32 %v472_v51, %v471_v40 }
  0xb5   : > { %v394_v30 = vsel %vm372_vm1, %v357_v24, 0.0  ;;  %v479_v13 = vrot.slane %v478_v55, 4 }
  0xb6   : > { %v389_v31 = vadd.f32 %v388_v25, %v387_v22  ;;  %v395_v35 = vrot.slane %v394_v30, 4  ;;  %v385_v48 = vrot.slane %v384_v37, 1  ;;  %v379_v10 = vadd.f32 %v378_v41, %v377_v32 }
  0xb7   : > { %v474_v26 = vrot.slane %v473_v1, 2 }
  0xb8   : > { %v390_v38 = vrot.slane %v389_v31, 2  ;;  %v396_v44 = vadd.f32 %v395_v35, %v394_v30  ;;  %v386_v14 = vadd.f32 %v385_v48, %v384_v37  ;;  %v480_v30 = vadd.f32 %v479_v13, %v478_v55 }
  0xb9   : > { %v492_v35 = vmul.f32 %v1447_v60, %v379_v10 }
  0xba   : > { %v330_v17 = vpop.f32.mrf.mxu0  ;;  %v391_v52 = vadd.f32 %v390_v38, %v389_v31  ;;  %v397_v61 = vrot.slane %v396_v44, 2 }
  0xbb   : > { %v358_v36 = vrot.slane %v330_v17, 4  ;;  %v401_v53 = vsel %vm372_vm1, %v330_v17, 0.0 }
  0xbc   : > { %v402_v11 = vrot.slane %v401_v53, 4  ;;  %v392_v15 = vrot.slane %v391_v52, 1  ;;  %v398_v23 = vadd.f32 %v397_v61, %v396_v44 }
  0xbd   : > { %v408_v45 = vsel %vm372_vm1, %v358_v36, 0.0  ;;  %v493_v36 = vmul.f32 %v1447_v60, %v386_v14 }
  0xbe   : > { %v409_v56 = vrot.slane %v408_v45, 4  ;;  %v403_v27 = vadd.f32 %v402_v11, %v401_v53  ;;  %v393_v39 = vadd.f32 %v392_v15, %v391_v52  ;;  %v399_v40 = vrot.slane %v398_v23, 1 }
  0xc0   : > { %v410_v16 = vadd.f32 %v409_v56, %v408_v45  ;;  %v400_v52 = vadd.f32 %v399_v40, %v398_v23 }
  0xc2   : > { %v333_v28 = vpop.f32.mrf.mxu0  ;;  %v411_v31 = vrot.slane %v410_v16, 2 }
  0xc3   : > { %v359_v49 = vrot.slane %v333_v28, 4  ;;  %v415_v57 = vsel %vm372_vm1, %v333_v28, 0.0 }
  0xc4   : > { %v416_v12 = vrot.slane %v415_v57, 4 }
  0xc5   : > { %v422_v62 = vsel %vm372_vm1, %v359_v49, 0.0 }
  0xc6   : > { %v423_v20 = vrot.slane %v422_v62, 4  ;;  %v417_v28 = vadd.f32 %v416_v12, %v415_v57 }
  0xc8   : > { %v424_v37 = vadd.f32 %v423_v20, %v422_v62  ;;  %v418_v44 = vrot.slane %v417_v28, 2 }
  0xca   : > { %v336_v43 = vpop.f32.mrf.mxu0  ;;  %v425_v53 = vrot.slane %v424_v37, 2  ;;  %v419_v62 = vadd.f32 %v418_v44, %v417_v28 }
  0xcb   : > { %v360_v46 = vrot.slane %v336_v43, 4  ;;  %v429_v47 = vsel %vm372_vm1, %v336_v43, 0.0  ;;  %v404_v43 = vrot.slane %v403_v27, 2 }
  0xcc   : > { %v430_v50 = vrot.slane %v429_v47, 4  ;;  %v426_v14 = vadd.f32 %v425_v53, %v424_v37  ;;  %v420_v23 = vrot.slane %v419_v62, 1 }
  0xcd   : > { %v436_v54 = vsel %vm372_vm1, %v360_v46, 0.0  ;;  %v475_v46 = vadd.f32 %v474_v26, %v473_v1  ;;  %v405_v61 = vadd.f32 %v404_v43, %v403_v27 }
  0xce   : > { %v431_v58 = vadd.f32 %v430_v50, %v429_v47  ;;  %v437_v59 = vrot.slane %v436_v54, 4  ;;  %v412_v47 = vadd.f32 %v411_v31, %v410_v16  ;;  %v481_v50 = vrot.slane %v480_v30, 2 }
  0xcf   : > { %v476_v31 = vrot.slane %v475_v46, 1 }
  0xd0   : > { %v432_v63 = vrot.slane %v431_v58, 2  ;;  %v438_v0 = vadd.f32 %v437_v59, %v436_v54  ;;  %v413_v13 = vrot.slane %v412_v47, 1  ;;  %v482_v16 = vadd.f32 %v481_v50, %v480_v30 }
  0xd2   : > { %v439_v17 = vrot.slane %v438_v0, 2  ;;  %v339_v19 = vpop.f32.mrf.mxu0  ;;  %v433_v21 = vadd.f32 %v432_v63, %v431_v58  ;;  %v483_v30 = vrot.slane %v482_v16, 1 }
  0xd3   : > { %v361_v22 = vrot.slane %v339_v19, 4  ;;  %v443_v18 = vsel %vm372_vm1, %v339_v19, 0.0 }
  0xd4   : > { %v440_v24 = vadd.f32 %v439_v17, %v438_v0  ;;  %v444_v25 = vrot.slane %v443_v18, 4  ;;  %v434_v38 = vrot.slane %v433_v21, 1  ;;  %v484_v50 = vadd.f32 %v483_v30, %v482_v16 }
  0xd5   : > { %v450_v29 = vsel %vm372_vm1, %v361_v22, 0.0  ;;  %v494_v22 = vmul.f32 %v1447_v60, %v393_v39  ;;  %v495_v39 = vmul.f32 %v1447_v60, %v400_v52 }
  0xd6   : > { %v441_v32 = vrot.slane %v440_v24, 1  ;;  %v445_v33 = vadd.f32 %v444_v25, %v443_v18  ;;  %v451_v34 = vrot.slane %v450_v29, 4  ;;  %v435_v54 = vadd.f32 %v434_v38, %v433_v21 }
  0xd7   : > { %v406_v18 = vrot.slane %v405_v61, 1  ;;  %v525_v38 = vsel %vm524_vm3, %v493_v36, %v492_v35 }
  0xd8   : > { %v446_v41 = vrot.slane %v445_v33, 2  ;;  %v452_v42 = vadd.f32 %v451_v34, %v450_v29  ;;  %v442_v45 = vadd.f32 %v441_v32, %v440_v24  ;;  %v500_v15 = vmul.f32 %v1447_v60, %v435_v54 }
  0xd9   : > { %v414_v29 = vadd.f32 %v413_v13, %v412_v47  ;;  %v427_v32 = vrot.slane %v426_v14, 1  ;;  %v407_v40 = vadd.f32 %v406_v18, %v405_v61 }
  0xda   : > { %v447_v48 = vadd.f32 %v446_v41, %v445_v33  ;;  %v453_v49 = vrot.slane %v452_v42, 2  ;;  %v342_v51 = vpop.f32.mrf.mxu0  ;;  %v501_v63 = vmul.f32 %v1447_v60, %v442_v45  ;;  %v421_v41 = vadd.f32 %v420_v23, %v419_v62 }
  0xdb   : > { %v362_v55 = vrot.slane %v342_v51, 4  ;;  %v457_v56 = vsel %vm372_vm1, %v342_v51, 0.0  ;;  %v1257_v45 = vmov 1983009808   ;;  %v497_v51 = vmul.f32 %v1447_v60, %v414_v29 }
  0xdc   : > { %v448_v57 = vrot.slane %v447_v48, 1  ;;  %v454_v58 = vadd.f32 %v453_v49, %v452_v42  ;;  %v458_v59 = vrot.slane %v457_v56, 4  ;;  %v533_v24 = vsel %vm524_vm3, %v501_v63, %v500_v15 }
  0xdd   : > { %v464_v0 = vsel %vm372_vm1, %v362_v55, 0.0  ;;  %v527_v42 = vsel %vm526_vm4, %v494_v22, %v525_v38  ;;  %v477_v49 = vadd.f32 %v476_v31, %v475_v46  ;;  %v428_v53 = vadd.f32 %v427_v32, %v426_v14 }
  0xde   : > { %v449_v1 = vadd.f32 %v448_v57, %v447_v48  ;;  %v455_v10 = vrot.slane %v454_v58, 1  ;;  %v459_v11 = vadd.f32 %v458_v59, %v457_v56  ;;  %v465_v12 = vrot.slane %v464_v0, 4 }
  0xdf   : > { %v547_v48 = vunpack.c.l.s4 %v1257_v45  ;;  %v496_v35 = vmul.f32 %v1447_v60, %v407_v40  ;;  %v498_v36 = vmul.f32 %v1447_v60, %v421_v41  ;;  %v529_v55 = vsel %vm528_vm5, %v495_v39, %v527_v42  ;;  %v619_v39 = vld [vmem:[%s1606_s2] sm:$0xf] }
  0xe0   : > { %v456_v17 = vadd.f32 %v455_v10, %v454_v58  ;;  %v502_v19 = vmul.f32 %v1447_v60, %v449_v1  ;;  %v460_v20 = vrot.slane %v459_v11, 2  ;;  %v466_v21 = vadd.f32 %v465_v12, %v464_v0 }
  0xe1   : > { %v1473_v57 = vunpack.c.0.s8 %v547_v48  ;;  %v506_v46 = vmul.f32 %v1447_v60, %v477_v49  ;;  %v530_v59 = vsel %vm524_vm3, %v497_v51, %v496_v35  ;;  %v499_v61 = vmul.f32 %v1447_v60, %v428_v53 }
  0xe2   : > { %v503_v25 = vmul.f32 %v1447_v60, %v456_v17  ;;  %v534_v26 = vsel %vm526_vm4, %v502_v19, %v533_v24  ;;  %v461_v27 = vadd.f32 %v460_v20, %v459_v11  ;;  %v467_v28 = vrot.slane %v466_v21, 2 }
  0xe3   : > { %v507_v62 = vmul.f32 %v1447_v60, %v484_v50  ;;  %v531_v0 = vsel %vm526_vm4, %v498_v36, %v530_v59  ;;  %v1258_v10 = vmov 1934713408   ;;  %v686_v36 = vld [vmem:[%s1608_s4] sm:$0xff] }
  0xe4   : > { %v535_v33 = vsel %vm528_vm5, %v503_v25, %v534_v26  ;;  %v462_v34 = vrot.slane %v461_v27, 1  ;;  %v468_v37 = vadd.f32 %v467_v28, %v466_v21  ;;  %v561_v11 = vunpack.c.l.s4 %v1258_v10 }
  0xe5   : > { %v543_v47 = vrot.slane %v535_v33, 4  ;;  %v532_v15 = vsel %vm528_vm5, %v499_v61, %v531_v0  ;;  %v590_v33 = vld [vmem:[%s1605_s1] sm:$0x3]  ;;  %v687_v61 = vld [vmem:[%s1608_s4 + $0x8] sm:$0xff] }
  0xe6   : > { %v463_v43 = vadd.f32 %v462_v34, %v461_v27  ;;  %v469_v44 = vrot.slane %v468_v37, 1  ;;  %v562_v17 = vunpack.c.0.s8 %v561_v11 }
  0xe7   : > { %v545_v58 = vsel %vm544_vm6, %v543_v47, %v529_v55 }
  0xe8   : > { %v470_v54 = vadd.f32 %v469_v44, %v468_v37  ;;  %v504_v56 = vmul.f32 %v1447_v60, %v463_v43  ;;  %v549_v13 = vperm.slane %v545_v58, %v1473_v57 }
  0xea   : > { %v505_v52 = vmul.f32 %v1447_v60, %v470_v54  ;;  %v558_v19 = vrot.slane %v549_v13, 4 }
  0xec   : > { %v536_v63 = vsel %vm524_vm3, %v505_v52, %v504_v56 }
  0xed   : > { %v537_v1 = vsel %vm526_vm4, %v506_v46, %v536_v63 }
  0xee   : > { %v538_v12 = vsel %vm528_vm5, %v507_v62, %v537_v1 }
  0xef   : > { %v550_v14 = vrot.slane %v538_v12, 4 }
  0xf1   : > { %v551_v16 = vsel %vm544_vm6, %v550_v14, %v532_v15 }
  0xf2   : > { %v555_v60 = vperm.slane %v551_v16, %v1473_v57 }
  0xf4   : > { %v559_v20 = vsel %vm544_vm6, %v555_v60, %v558_v19  ;;  %v556_v21 = vrot.slane %v555_v60, 4 }
  0xf5   : > { %v567_v22 = vperm.slane %v559_v20, %v562_v17 }
  0xf6   : > { %v557_v18 = vsel %vm544_vm6, %v556_v21, %v549_v13 }
  0xf7   : > { %v570_v23 = vrot.slane %v567_v22, 4  ;;  %v563_v24 = vperm.slane %v557_v18, %v562_v17 }
  0xf9   : > { %v571_v25 = vsel %vm544_vm6, 0.0, %v570_v23  ;;  %v568_v26 = vrot.slane %v563_v24, 4 }
  0xfa   : > { %581 = vrot.lane.b32.xlu1 %v571_v25, %s1259_s8 }
  0xfb   : > { %v569_v27 = vsel %vm544_vm6, 0.0, %v568_v26 }
  0xfc   : > { %573 = vrot.lane.b32.xlu0 %v569_v27, %s1260_s13  ;;  %s1206_s13 = scalar_lea.hbm %s1610_s6, 128 }
 0x104   : > { %577 = vrot.lane.b32.xlu0 %v567_v22, %s1261_s7 }
 0x16c   : > { %v582_v30 = vpop.permute.xlu1 %581 }
 0x16e   : > { %v574_v28 = vpop.permute.xlu0 %573 }
 0x16f   : > { %v585_v29 = vsel %vm584_vm7, %v563_v24, %v574_v28 }
 0x176   : > { %v578_v31 = vpop.permute.xlu0 %577 }
 0x177   : > { %v587_v32 = vsel %vm586_vm8, %v585_v29, %v578_v31 }
 0x178   : > { %v589_v34 = vsel %vm588_vm9, %v587_v32, %v582_v30 }
 0x179   : > { %1029 = vmatpush.msk.msra.mxu1 %vm594_vm10, %v589_v34 }
 0x17a   : > { %1030 = vmatmul.msk.f32.vlgmr.msra.gmra.mxu1 %vm584_vm7, %v590_v33 }
 0x1f7   : > { %v615_v37 = vpop.f32.mrf.mxu1 }
 0x1f8   : > { %v618_v38 = vmax.f32 %v615_v37, 0.0 }
 0x1fa   : > { %1031 = vmatpush.msk.msra.mxu2 %vm624_vm11, %v618_v38 }
 0x1fb   : > { %1032 = vmatmul.msk.f32.vlgmr.msra.gmra.mxu2 %vm620_vm12, %v619_v39 }
 0x27e   : > { %v645_v40 = vpop.f32.mrf.mxu2 }
 0x27f   : > { %655 = vrot.lane.b32.xlu2 %v645_v40, %s1262_s29  ;;  %652 = vrot.lane.b32.xlu1 %v645_v40, %s1263_s12  ;;  %s935_s29 = scalar_lea.hbm %s1610_s6, %s1060_s28  ;;  %s936_s12 = sshll.u32 %s1544_s15, 4  ;;  %s937_s12 = int_to_ptr.vmem [resolvable:$true] %s936_s12 }
 0x287   : > { %649 = vrot.lane.b32.xlu2 %v645_v40, %s1264_s17  ;;  %s938_s17 = sshll.u32 %s935_s29, 4  ;;  %s939_s17 = int_to_ptr.hbm [resolvable:$true] %s938_s17 }
 0x288   : > { %s1200_s19 = sshra.s32 %s939_s17, 4  ;;  %s1201_s19 = int_to_ptr.hbm [resolvable:$true] %s1200_s19 }
 0x289   : > { %s1202_s20 = scalar_lea.hbm %s1201_s19, 64  ;;  %p1207_p0 = scmp.lt.s32.totalorder %s1201_s19, %s1610_s6 }
 0x28a   : > { %p1203_p6 = scmp.ne.s32.totalorder %s1201_s19, %s1202_s20  ;;  %p1208_p1 = scmp.lt.s32.totalorder %s1206_s13, %s1202_s20 }
 0x28c   : > { %p1204_p9 = pnand %p1203_p6, %p1351_p11  ;;  %p1209_p3 = por %p1208_p1, %p1207_p0 }
 0x28e   : > { %p1205_p13 = pneg %p1204_p9 }
 0x290   : > { %p1210_p4 = pnand %p1209_p3, %p1205_p13 }
 0x2d9   : > { %v656_v41 = vpop.permute.xlu2 %655 }
 0x2da   : > { %v664_v43 = vrot.slane %v656_v41, 4 }
 0x2e1   : > { %v650_v42 = vpop.permute.xlu2 %649 }
 0x2e2   : > { %v665_v44 = vsel %vm544_vm6, %v664_v43, %v650_v42 }
 0x2e3   : > { %v669_v45 = vperm.slane %v665_v44, %v1473_v57 }
 0x2e5   : > { %v670_v50 = vrot.slane %v669_v45, 4 }
 0x2f1   : > { %v653_v48 = vpop.permute.xlu1 %652 }
 0x2f2   : > { %v658_v47 = vrot.slane %v653_v48, 4 }
 0x2f4   : > { %v659_v49 = vsel %vm544_vm6, %v658_v47, %v645_v40 }
 0x2f5   : > { %v663_v51 = vperm.slane %v659_v49, %v1473_v57  ;;  %v798_v57 = vld [vmem:[%s1609_s5] sm:$0xf] }
 0x2f7   : > { %v672_v53 = vrot.slane %v663_v51, 4  ;;  %v671_v54 = vsel %vm544_vm6, %v670_v50, %v663_v51 }
 0x2f8   : > { %v677_v35 = vperm.slane %v671_v54, %v562_v17 }
 0x2f9   : > { %v673_v55 = vsel %vm544_vm6, %v669_v45, %v672_v53 }
 0x2fa   : > { %1033 = vmatpush.msk.msrb.mxu3 %vm594_vm10, %v677_v35  ;;  %v681_v56 = vperm.slane %v673_v55, %v562_v17  ;;  %v682_v52 = vrot.slane %v677_v35, 4 }
 0x2fb   : > { %1034 = vmatmul.msk.f32.vlgmr.msrb.gmra.mxu3 %vm584_vm7, %v686_v36 }
 0x2fc   : > { %v684_v46 = vrot.slane %v681_v56, 4  ;;  %1039 = vmatpush.msk.msrb.mxu2 %vm594_vm10, %v681_v56  ;;  %v683_v58 = vsel %vm544_vm6, 0.0, %v682_v52 }
 0x2fd   : > { %1036 = vmatpush.msk.msrb.mxu1 %vm594_vm10, %v683_v58  ;;  %1040 = vmatmul.msk.f32.vlgmr.msrb.gmra.mxu2 %vm584_vm7, %v686_v36 }
 0x2fe   : > { %v685_v59 = vsel %vm544_vm6, 0.0, %v684_v46  ;;  %1037 = vmatmul.msk.f32.vlgmr.msrb.gmra.mxu1 %vm584_vm7, %v686_v36  ;;  %1063 = vmatpush.msk.msra.mxu2 %vm594_vm10, %v798_v57 }
 0x2ff   : > { %1042 = vmatpush.msk.msra.mxu3 %vm594_vm10, %v685_v59  ;;  %1045 = vmatpush.msk.msra.mxu1 %vm594_vm10, %v798_v57 }
 0x303   : > { %1035 = vmatmul.msk.f32.gmra.mxu3 %vm584_vm7, %v687_v61 }
 0x305   : > { %1041 = vmatmul.msk.f32.gmra.mxu2 %vm584_vm7, %v687_v61 }
 0x306   : > { %1038 = vmatmul.msk.f32.gmra.mxu1 %vm584_vm7, %v687_v61 }
 0x30b   : > { %1043 = vmatmul.msk.f32.vlgmr.msra.gmra.mxu3 %vm584_vm7, %v686_v36 }
 0x313   : > { %1044 = vmatmul.msk.f32.gmra.mxu3 %vm584_vm7, %v687_v61 }
 0x37b   : > { %v740_v10 = vpop.f32.mrf.mxu1 }
 0x37e   : > { %v714_v62 = vpop.f32.mrf.mxu3 }
 0x37f   : > { %1046 = vmatmul.msk.f32.vlgmr.msra.gmra.mxu1 %vm584_vm7, %v714_v62 }
 0x380   : > { %v766_v63 = vpop.f32.mrf.mxu2 }
 0x381   : > { %1050 = vmatmul.msk.f32.vlgmr.msra.gmra.mxu2 %vm584_vm7, %v766_v63 }
 0x383   : > { %v743_v12 = vpop.f32.mrf.mxu1 }
 0x386   : > { %v717_v0 = vpop.f32.mrf.mxu3 }
 0x387   : > { %1047 = vmatmul.msk.f32.gmra.mxu1 %vm584_vm7, %v717_v0 }
 0x388   : > { %v769_v1 = vpop.f32.mrf.mxu2 }
 0x389   : > { %1051 = vmatmul.msk.f32.gmra.mxu2 %vm584_vm7, %v769_v1 }
 0x38e   : > { %v792_v11 = vpop.f32.mrf.mxu3 }
 0x38f   : > { %1048 = vmatmul.msk.f32.gmra.mxu1 %vm584_vm7, %v740_v10 }
 0x391   : > { %1052 = vmatmul.msk.f32.gmra.mxu2 %vm584_vm7, %v792_v11 }
 0x396   : > { %v795_v13 = vpop.f32.mrf.mxu3 }
 0x397   : > { %1049 = vmatmul.msk.f32.gmra.mxu1 %vm584_vm7, %v743_v12 }
 0x399   : > { %1053 = vmatmul.msk.f32.gmra.mxu2 %vm584_vm7, %v795_v13 }
 0x3fc   : > { %v843_v14 = vpop.f32.mrf.mxu1 }
 0x3fd   : > { %v867_v15 = vsub.f32 0.0, %v843_v14 }
 0x3ff   : > { %v875_v16 = vmul.f32 1.442695, %v867_v15 }
 0x401   : > { %1124 = vpow2.f32 %v875_v16 }
 0x404   : > { %v855_v17 = vpop.f32.mrf.mxu2  ;;  %v846_v60 = vpop.f32.mrf.mxu1 }
 0x405   : > { %v871_v19 = vsub.f32 0.0, %v855_v17  ;;  %v868_v20 = vsub.f32 0.0, %v846_v60 }
 0x407   : > { %v1125_v21 = vpop.eup %1124  ;;  %v883_v22 = vmul.f32 1.442695, %v871_v19  ;;  %v877_v18 = vmul.f32 1.442695, %v868_v20 }
 0x408   : > { %v891_v23 = vadd.f32 1.0, %v1125_v21 }
 0x409   : > { %1126 = vpow2.f32 %v883_v22 }
 0x40a   : > { %1128 = vrcp.f32 %v891_v23 }
 0x40b   : > { %1130 = vpow2.f32 %v877_v18 }
 0x40c   : > { %v858_v24 = vpop.f32.mrf.mxu2  ;;  %v849_v25 = vpop.f32.mrf.mxu1 }
 0x40d   : > { %v872_v26 = vsub.f32 0.0, %v858_v24  ;;  %v869_v27 = vsub.f32 0.0, %v849_v25 }
 0x40f   : > { %v1127_v28 = vpop.eup %1126  ;;  %v885_v29 = vmul.f32 1.442695, %v872_v26  ;;  %v879_v31 = vmul.f32 1.442695, %v869_v27 }
 0x410   : > { %v1129_v30 = vpop.eup %1128  ;;  %v895_v32 = vadd.f32 1.0, %v1127_v28 }
 0x411   : > { %v1131_v33 = vpop.eup %1130  ;;  %v907_v34 = vmul.f32 %v1129_v30, %v1403_v2  ;;  %1132 = vpow2.f32 %v885_v29 }
 0x412   : > { %1134 = vrcp.f32 %v895_v32  ;;  %v892_v37 = vadd.f32 1.0, %v1131_v33 }
 0x413   : > { %915 = vst.msk [vmem:[%s1544_s15] sm:$0xff] %vm282_vm0, %v907_v34  ;;  %1136 = vpow2.f32 %v879_v31 }
 0x414   : > { %1138 = vrcp.f32 %v892_v37  ;;  %v861_v38 = vpop.f32.mrf.mxu2  ;;  %v852_v39 = vpop.f32.mrf.mxu1 }
 0x415   : > { %v873_v40 = vsub.f32 0.0, %v861_v38  ;;  %v870_v41 = vsub.f32 0.0, %v852_v39 }
 0x417   : > { %v1133_v42 = vpop.eup %1132  ;;  %v887_v43 = vmul.f32 1.442695, %v873_v40  ;;  %v881_v2 = vmul.f32 1.442695, %v870_v41 }
 0x418   : > { %v1135_v44 = vpop.eup %1134  ;;  %v896_v45 = vadd.f32 1.0, %v1133_v42 }
 0x419   : > { %v1137_v48 = vpop.eup %1136  ;;  %v911_v47 = vmul.f32 %v1135_v44, %v1423_v7  ;;  %1140 = vpow2.f32 %v887_v43 }
 0x41a   : > { %v1139_v49 = vpop.eup %1138  ;;  %1142 = vrcp.f32 %v896_v45  ;;  %v893_v50 = vadd.f32 1.0, %v1137_v48 }
 0x41b   : > { %919 = vst.msk [vmem:[%s1544_s15 + $0x20] sm:$0xff] %vm282_vm0, %v911_v47  ;;  %v908_v51 = vmul.f32 %v1139_v49, %v1411_v4  ;;  %1144 = vpow2.f32 %v881_v2 }
 0x41c   : > { %1146 = vrcp.f32 %v893_v50  ;;  %v864_v53 = vpop.f32.mrf.mxu2 }
 0x41d   : > { %916 = vst.msk [vmem:[%s1544_s15 + $0x8] sm:$0xff] %vm282_vm0, %v908_v51  ;;  %v874_v54 = vsub.f32 0.0, %v864_v53 }
 0x41f   : > { %v1141_v35 = vpop.eup %1140  ;;  %v889_v36 = vmul.f32 1.442695, %v874_v54 }
 0x420   : > { %v1143_v7 = vpop.eup %1142  ;;  %v897_v55 = vadd.f32 1.0, %v1141_v35 }
 0x421   : > { %v1145_v56 = vpop.eup %1144  ;;  %v912_v52 = vmul.f32 %v1143_v7, %v1427_v8  ;;  %1148 = vpow2.f32 %v889_v36 }
 0x422   : > { %v1147_v57 = vpop.eup %1146  ;;  %1150 = vrcp.f32 %v897_v55  ;;  %v894_v4 = vadd.f32 1.0, %v1145_v56 }
 0x423   : > { %920 = vst.msk [vmem:[%s1544_s15 + $0x28] sm:$0xff] %vm282_vm0, %v912_v52  ;;  %v909_v46 = vmul.f32 %v1147_v57, %v1415_v5 }
 0x424   : > { %1152 = vrcp.f32 %v894_v4 }
 0x425   : > { %917 = vst.msk [vmem:[%s1544_s15 + $0x10] sm:$0xff] %vm282_vm0, %v909_v46 }
 0x427   : > { %v1149_v58 = vpop.eup %1148 }
 0x428   : > { %v1151_v59 = vpop.eup %1150  ;;  %v898_v61 = vadd.f32 1.0, %v1149_v58 }
 0x429   : > { %v913_v8 = vmul.f32 %v1151_v59, %v1431_v9 }
 0x42a   : > { %v1153_v62 = vpop.eup %1152  ;;  %1154 = vrcp.f32 %v898_v61 }
 0x42b   : > { %921 = vst.msk [vmem:[%s1544_s15 + $0x30] sm:$0xff] %vm282_vm0, %v913_v8  ;;  %v910_v63 = vmul.f32 %v1153_v62, %v1419_v6 }
 0x42d   : > { %918 = vst.msk [vmem:[%s1544_s15 + $0x18] sm:$0xff] %vm282_vm0, %v910_v63 }
 0x430   : > { %v1155_v5 = vpop.eup %1154 }
 0x431   : > { %v914_v0 = vmul.f32 %v1155_v5, %v1407_v3 }
 0x433   : > { %922 = vst.msk [vmem:[%s1544_s15 + $0x38] sm:$0xff] %vm282_vm0, %v914_v0 }
 0x434   : > { %1213 = shalt.err (!%p1210_p4)
}
 0x435   : > { %s1265_s18 = smov 128  }
 0x436   : > { %1066 = dma.vmem_to_hbm [thread:$0]  (%p1351_p11), %s937_s12, 1024, %s939_s17, %s924_s25, %s1265_s18, %s1265_s18, %s1261_s7  }
 0x437 PF: > { %s953_s15 = sand.u32 1, %s1240_s21   ;;  %p1616_p7 = scmp.ge.s32.totalorder %s1252_s24, 2 }
 0x438   : > { %s954_s11 = scalar_lea.sflag [#allocation4], %s953_s15 }
 0x439   : > { %p1073_p5 = pnand %p1616_p7, %p1355_p12 }
 0x43b   : > { %p1074_p8 = pneg %p1073_p5 }
 0x43d   : > { %1235 = dma.done.wait (%p1074_p8), %s954_s11, 1024  }
 0x43e   : > { %1237 = vsyncadd (%p1074_p8), %s954_s11, 4294966272  ;;  %p19_p10 = scmp.ge.s32.totalorder %s1326_s27, 4   ;;  %s1617_s21 = smov %s1244_s22 }
 0x43f   : > { %s1618_s22 = smov %s1248_s23  ;;  %s1619_s23 = smov %s1338_s30 }
 0x440   : > { %s1620_s24 = smov %s1326_s27  ;;  %21 = sbr.rel (!%p19_p10) target bundleno = 5 (0x5), region = 89 }
 0x445   :  { %960 = vsyncpa [#allocation3], 1 }
 0x446   :  { %962 = vsyncpa [#allocation3 + $0x1], 1 }
 0x447   :  { %963 = vsyncpa [#allocation4], 1 }
 0x448   :  { %965 = vsyncpa [#allocation4 + $0x1], 1 }

</bundles_post_ra>
